<compile_context>
chip_gen: v7x
topology: tpu7x:2x2x1
jax: 0.10.0
libtpu: 0.0.40
codegen_flags: <defaults>
</compile_context>

<pallas_src>
import jax
import jax.numpy as jnp
from jax.experimental import pallas as pl
from jax.experimental.pallas import tpu as pltpu


def _attention_kernel(x_ref, a_ref, o_ref):
    """x_ref: (TB, S, H); a_ref: (1, H); o_ref: (TB, H)."""
    x = x_ref[...]                               # native dtype; no full-tile upcast
    a = a_ref[...].astype(jnp.float32)           # (1, H) tiny; implicit broadcast

    # attention_score[b, s] = sum_h x[b, s, h] * a[h]  (f32 accumulation via promotion)
    score = jnp.sum(x * a, axis=-1)              # (TB, S), f32

    # softmax over the sequence axis (== F.softmax(dim=1) on the (B, S) scores)
    score = score - jnp.max(score, axis=-1, keepdims=True)
    e = jnp.exp(score)                           # (TB, S)
    denom = jnp.sum(e, axis=-1, keepdims=True)   # (TB, 1)
    r = pl.reciprocal(denom, approx=True)        # EUP slot (otherwise idle)
    r = r * (2.0 - denom * r)                    # one Newton step -> ~f32 accuracy
    w = e * r                                    # (TB, S), f32

    # condensed_x[b, h] = sum_s x[b, s, h] * w[b, s]  (f32 accumulation)
    out = jnp.sum(x * w[:, :, None], axis=1)     # (TB, H), f32
    o_ref[...] = out.astype(o_ref.dtype)


def _round_up(n, m):
    return ((n + m - 1) // m) * m


def _padded_vmem_bytes(block_shape, dtype):
    """VMEM bytes for ONE buffer of a block: last dim pads to 128 lanes,
    second-to-last to the dtype's sublane multiple (8 for 4B, 16 for 2B, 32 for 1B)."""
    itemsize = jnp.dtype(dtype).itemsize
    sublane = {4: 8, 2: 16, 1: 32}.get(itemsize, 8)
    dims = list(block_shape)
    dims[-1] = _round_up(dims[-1], 128)
    if len(dims) >= 2:
        dims[-2] = _round_up(dims[-2], sublane)
    total = itemsize
    for d in dims:
        total *= d
    return total


def _hbm_step_target_bytes():
    """Per-grid-step HBM byte target, per TPU generation."""
    try:
        kind = jax.devices()[0].device_kind.lower()
    except Exception:
        kind = ""
    if "v7" in kind:
        return 12 << 20   # ~3.2 TB/s/TC: 8-16 MiB steps hide the ~0.35us overhead
    if "v6" in kind:
        return 6 << 20    # ~1.4 TB/s: 4-8 MiB steps
    if "v5" in kind:
        return 3 << 20    # ~0.8 TB/s: 2-4 MiB steps
    return 4 << 20


_VMEM_LIMIT_BYTES = 48 << 20    # <= v7x's 64 MiB physical VMEM; generous on v5e/v6e
_VMEM_BUDGET_BYTES = 40 << 20   # headroom under the limit for the block buffers


def _pick_batch_block(B, S, H, dtype, *, hbm_target_bytes, vmem_budget_bytes):
    """Largest divisor of B whose block fits the HBM-step target and the padded,
    double-buffered VMEM budget; prefer >=2 grid steps so both v7x TCs get work."""
    itemsize = jnp.dtype(dtype).itemsize

    def fits(tb):
        hbm = tb * S * H * itemsize                             # true bytes per step
        vmem = 2 * (_padded_vmem_bytes((tb, S, H), dtype)       # x block (x2 buffers)
                    + _padded_vmem_bytes((tb, H), dtype)        # output block
                    + _padded_vmem_bytes((1, H), dtype))        # attention vector
        return hbm <= hbm_target_bytes and vmem <= vmem_budget_bytes

    def layout_ok(tb):
        # (tb, H) output block: keep the sublane dim a multiple of 8 unless the
        # block spans the whole batch (full-dim blocks are always legal).
        return tb == B or tb % 8 == 0

    divisors = [d for d in range(1, B + 1) if B % d == 0]
    for need_multi_step in (True, False):
        cands = [d for d in divisors
                 if fits(d) and layout_ok(d)
                 and not (need_multi_step and d == B and B > 1)]
        if cands:
            return max(cands)
    return 1  # TODO(synk): degenerate fallback; never hit for realistic shapes


def attention_forward(x, attn, *, batch_block=None):
    """x: (B, S, H), attn: (H, 1) -> (B, H). Matches Attention.forward."""
    B, S, H = x.shape
    assert attn.shape == (H, 1)

    if batch_block is None:
        batch_block = _pick_batch_block(
            B, S, H, x.dtype,
            hbm_target_bytes=_hbm_step_target_bytes(),
            vmem_budget_bytes=_VMEM_BUDGET_BYTES)
    tb = batch_block
    assert B % tb == 0, "batch_block must divide the batch size"

    attn2 = attn.reshape(1, H)   # lane-major attention vector

    out = pl.pallas_call(
        _attention_kernel,
        out_shape=jax.ShapeDtypeStruct((B, H), x.dtype),
        grid_spec=pltpu.PrefetchScalarGridSpec(
            num_scalar_prefetch=0,
            grid=(B // tb,),
            in_specs=[
                pl.BlockSpec((tb, S, H), lambda g: (g, 0, 0)),
                pl.BlockSpec((1, H), lambda g: (0, 0)),
            ],
            out_specs=pl.BlockSpec((tb, H), lambda g: (g, 0)),
        ),
        compiler_params=pltpu.CompilerParams(
            dimension_semantics=("parallel",),
            vmem_limit_bytes=_VMEM_LIMIT_BYTES,
        ),
    )(x, attn2)
    return out


def _reference(x, attn):
    score = jnp.squeeze(jnp.matmul(x, attn), axis=-1)   # (B, S)
    score = jax.nn.softmax(score, axis=1)               # old-style F.softmax -> dim=1
    return jnp.sum(x * score[:, :, None], axis=1)       # (B, H)


if __name__ == "__main__":
    key = jax.random.PRNGKey(0)
    kx, ka = jax.random.split(key)

    B, S, H = 2, 8, 32  # batch, seq, attention_size

    x = jax.random.normal(kx, (B, S, H), dtype=jnp.float32)

    # Deterministic xavier_normal init for the (H, 1) attention parameter:
    # std = sqrt(2 / (fan_in + fan_out)) = sqrt(2 / (H + 1))
    std = (2.0 / (H + 1)) ** 0.5
    attn = std * jax.random.normal(ka, (H, 1), dtype=jnp.float32)

    out = attention_forward(x, attn)
    out = jax.block_until_ready(out)

    ref = _reference(x, attn)
    assert out.shape == (B, H)
    assert jnp.allclose(out, ref, atol=1e-5, rtol=1e-5), "mismatch vs reference"

    print("KERNEL_OK")
</pallas_src>

<mosaic_0001>
module attributes {stable_mosaic.version = 11 : i64} {
  func.func @_attention_kernel(%arg0: i32, %arg1: memref<2x8x32xf32, #tpu.memory_space<vmem>>, %arg2: memref<1x32xf32, #tpu.memory_space<vmem>>, %arg3: memref<2x32xf32, #tpu.memory_space<vmem>>) attributes {dimension_semantics = [#tpu.dimension_semantics<parallel>], iteration_bounds = array<i64: 1>, scalar_prefetch = 0 : i64, scratch_operands = 0 : i64, tpu.core_type = #tpu.core_type<tc>, window_params = [{transform_indices = @transform_0, window_bounds = array<i64: 2, 8, 32>}, {pipeline_mode = #tpu.pipeline_mode<synchronous>, transform_indices = @transform_1, window_bounds = array<i64: 1, 32>}, {transform_indices = @transform_2, window_bounds = array<i64: 2, 32>}]} {
    %c0 = arith.constant 0 : index
    %c0_0 = arith.constant 0 : index
    %c0_1 = arith.constant 0 : index
    %0 = vector.load %arg1[%c0, %c0_0, %c0_1] : memref<2x8x32xf32, #tpu.memory_space<vmem>>, vector<2x8x32xf32>
    %c0_2 = arith.constant 0 : index
    %c0_3 = arith.constant 0 : index
    %1 = vector.load %arg2[%c0_2, %c0_3] : memref<1x32xf32, #tpu.memory_space<vmem>>, vector<1x32xf32>
    %2 = vector.shape_cast %1 : vector<1x32xf32> to vector<1x1x32xf32>
    %3 = vector.broadcast %2 : vector<1x1x32xf32> to vector<2x8x32xf32>
    %4 = arith.mulf %0, %3 : vector<2x8x32xf32>
    %cst = arith.constant dense<0.000000e+00> : vector<2x8xf32>
    %5 = vector.multi_reduction <add>, %4, %cst [2] : vector<2x8x32xf32> to vector<2x8xf32>
    %cst_4 = arith.constant dense<0xFF800000> : vector<2xf32>
    %6 = vector.multi_reduction <maximumf>, %5, %cst_4 [1] : vector<2x8xf32> to vector<2xf32>
    %7 = vector.shape_cast %6 : vector<2xf32> to vector<2x1xf32>
    %8 = vector.broadcast %7 : vector<2x1xf32> to vector<2x8xf32>
    %9 = arith.subf %5, %8 : vector<2x8xf32>
    %10 = math.exp %9 : vector<2x8xf32>
    %cst_5 = arith.constant dense<0.000000e+00> : vector<2xf32>
    %11 = vector.multi_reduction <add>, %10, %cst_5 [1] : vector<2x8xf32> to vector<2xf32>
    %12 = vector.shape_cast %11 : vector<2xf32> to vector<2x1xf32>
    %13 = tpu.reciprocal %12 {approx = true} : vector<2x1xf32> -> vector<2x1xf32>
    %14 = arith.mulf %12, %13 : vector<2x1xf32>
    %cst_6 = arith.constant 2.000000e+00 : f32
    %15 = vector.broadcast %cst_6 : f32 to vector<2x1xf32>
    %16 = arith.subf %15, %14 : vector<2x1xf32>
    %17 = arith.mulf %13, %16 : vector<2x1xf32>
    %18 = vector.broadcast %17 : vector<2x1xf32> to vector<2x8xf32>
    %19 = arith.mulf %10, %18 : vector<2x8xf32>
    %20 = vector.shape_cast %19 : vector<2x8xf32> to vector<2x8x1xf32>
    %21 = vector.broadcast %20 : vector<2x8x1xf32> to vector<2x8x32xf32>
    %22 = arith.mulf %0, %21 : vector<2x8x32xf32>
    %cst_7 = arith.constant dense<0.000000e+00> : vector<2x32xf32>
    %23 = vector.multi_reduction <add>, %22, %cst_7 [1] : vector<2x8x32xf32> to vector<2x32xf32>
    %c0_8 = arith.constant 0 : index
    %c0_9 = arith.constant 0 : index
    %24 = vector.load %arg3[%c0_8, %c0_9] : memref<2x32xf32, #tpu.memory_space<vmem>>, vector<2x32xf32>
    tpu.vector_store %arg3[%c0_8, %c0_9], %23 {strides = array<i32>} : memref<2x32xf32, #tpu.memory_space<vmem>>, vector<2x32xf32>,
    return
  }
  func.func @transform_0(%arg0: i32) -> (i32, i32, i32) {
    %c0_i32 = arith.constant 0 : i32
    %c0_i32_0 = arith.constant 0 : i32
    %c0_i32_1 = arith.constant 0 : i32
    return %arg0, %c0_i32, %c0_i32_0 : i32, i32, i32
  }
  func.func @transform_1(%arg0: i32) -> (i32, i32) {
    %c0_i32 = arith.constant 0 : i32
    %c0_i32_0 = arith.constant 0 : i32
    %c0_i32_1 = arith.constant 0 : i32
    return %c0_i32, %c0_i32_0 : i32, i32
  }
  func.func @transform_2(%arg0: i32) -> (i32, i32) {
    %c0_i32 = arith.constant 0 : i32
    %c0_i32_0 = arith.constant 0 : i32
    return %arg0, %c0_i32 : i32, i32
  }
}

</mosaic_0001>

<bundles_post_ra>
// kernel: tpu_custom_call.1
= control target key start
LH: loop header
LB: loop body
LE: loop exit
PB: predicated region body
PF: predicated region fallthrough
CT: control target
= control target key end

     0   :  { %7 = vsyncpa [#allocation3], 0  ;;  %s283_s0 = inlined_call_operand.hbm [shape: f32[2,8,32], index: 0, kind: input, shape index: {}]   ;;  %s284_s1 = inlined_call_operand.vmem [shape: f32[1,32], index: 1, kind: input, shape index: {}]   ;;  %s285_s2 = inlined_call_operand.hbm [shape: f32[2,32], index: 2, kind: output, shape index: {}]  }
   0x1   :  { %8 = vsyncpa [#allocation4], 0  ;;  %s227_s9 = smov [#allocation2]   ;;  %s179_s13 = scalar_lea.hbm %s283_s0, 256 }
   0x2   :  { %s14_s10 = sshll.u32 %s227_s9, 4  ;;  %p180_p0 = scmp.ne.s32.totalorder %s283_s0, %s179_s13  ;;  %s15_s10 = int_to_ptr.vmem [resolvable:$true] %s14_s10 }
   0x3   :  { %p183_p1 = scmp.lt.u32.totalorder %s179_s13, %s283_s0 }
   0x5   :  { %p185_p2 = pnand %p183_p1, %p180_p0 }
   0x7   :  { %188 = shalt.err (!%p185_p2)
}
   0x8   :  { %s189_s18 = scalar_lea.vmem %s15_s10, 256  ;;  %p194_p4 = scmp.lt.s32.totalorder %s15_s10, %s15_s10 }
   0x9   :  { %p190_p3 = scmp.ne.s32.totalorder %s15_s10, %s189_s18  ;;  %p195_p5 = scmp.lt.s32.totalorder %s189_s18, %s189_s18 }
   0xb   :  { %p196_p6 = por %p195_p5, %p194_p4 }
   0xd   :  { %p197_p7 = pnand %p196_p6, %p190_p3 }
   0xf   :  { %200 = shalt.err (!%p197_p7)
}
  0x10   :  { %s228_s19 = smov 128   ;;  %s229_s20 = smov 8  }
  0x11   :  { %20 = dma.hbm_to_vmem [thread:$0]  %s283_s0, 256, %s15_s10, [#allocation3], %s228_s19, %s228_s19, %s229_s20  }
  0x12   :  { %223 = dma.done.wait [#allocation3], 256  }
  0x13   :  { %224 = vsyncadd [#allocation3], 4294967040  ;;  %v26_v0 = vld [vmem:[#allocation2] sm:$0xff]  ;;  %vm37_vm0 = vcmask 261120   ;;  %v27_v2 = vld [vmem:[#allocation2 + $0x8] sm:$0xff]  ;;  %v46_v7 = vlaneseq  ;;  %vm56_vm1 = vcmask 1041409  }
  0x14   :  { %v165_v1 = vld [vmem:[%s284_s1] ss:$0 sm:$0xff]  ;;  %vm59_vm2 = vcmask 58368   ;;  %v230_v17 = vmov 0   ;;  %s231_s0 = smov [#allocation5]   ;;  %vm148_vm3 = vcmask 254976  }
  0x15   :  { %v35_v3 = vmul.f32 %v165_v1, %v26_v0  ;;  %v36_v4 = vmul.f32 %v165_v1, %v27_v2  ;;  %v47_v8 = vand.u32 127, %v46_v7  ;;  %v49_v9 = vshrl.u32 %v46_v7, 7  ;;  %172 = vset.pattern.permute.xlu0 %v230_v17  ;;  %171 = vset.pattern.permute.xlu1 %v230_v17  ;;  %s156_s1 = sshll.u32 %s231_s0, 4  ;;  %s157_s1 = int_to_ptr.vmem [resolvable:$true] %s156_s1 }
  0x16   :  { %s201_s25 = scalar_lea.vmem %s157_s1, 32  ;;  %p206_p9 = scmp.lt.s32.totalorder %s157_s1, %s157_s1 }
  0x17   :  { %v38_v5 = vsel %vm37_vm0, %v35_v3, 0.0  ;;  %v41_v6 = vsel %vm37_vm0, %v36_v4, 0.0  ;;  %v50_v11 = vsub.s32 %v47_v8, %v49_v9  ;;  %v66_v18 = vsub.s32 0, %v49_v9  ;;  %p202_p8 = scmp.ne.s32.totalorder %s157_s1, %s201_s25  ;;  %p207_p10 = scmp.lt.s32.totalorder %s201_s25, %s201_s25 }
  0x18   :  { %39 = vadd.xlane.f32.xlu0 %v38_v5  ;;  %v70_v19 = vsub.s32 1, %v49_v9 }
  0x19   :  { %p208_p11 = por %p207_p10, %p206_p9 }
  0x1b   :  { %p209_p12 = pnand %p208_p11, %p202_p8 }
  0x1c   :  { %42 = vadd.xlane.f32.xlu0 %v41_v6 }
  0xa5   :  { %v40_v10 = vpop.xlane.xlu0 %39 }
  0xa6   :  { %v51_v13 = vrot.slane %v40_v10, %v50_v11 }
  0xa9   :  { %v43_v12 = vpop.xlane.xlu0 %42 }
  0xaa   :  { %v55_v14 = vrot.slane %v43_v12, %v50_v11 }
  0xac   :  { %v57_v15 = vsel %vm56_vm1, %v55_v14, %v51_v13 }
  0xad   :  { %v60_v16 = vsel %vm59_vm2, %v57_v15, -inf }
  0xae   :  { %61 = vmax.xlane.f32.xlu1 %v60_v16 }
 0x13b   :  { %v62_v20 = vpop.xlane.xlu1 %61 }
 0x13c   :  { %v67_v21 = vrot.slane %v62_v20, %v66_v18  ;;  %v71_v22 = vrot.slane %v62_v20, %v70_v19 }
 0x13e   :  { %v74_v23 = vsub.f32 %v40_v10, %v67_v21  ;;  %v75_v24 = vsub.f32 %v43_v12, %v71_v22 }
 0x140   :  { %v76_v25 = vmul.f32 1.442695, %v74_v23  ;;  %v78_v26 = vmul.f32 1.442695, %v75_v24 }
 0x142   :  { %173 = vpow2.f32 %v76_v25 }
 0x143   :  { %175 = vpow2.f32 %v78_v26 }
 0x14c   :  { %v174_v27 = vpop.eup %173 }
 0x14d   :  { %v176_v28 = vpop.eup %175  ;;  %83 = vperm.xlu1 %171, %v174_v27  }
 0x14e   :  { %86 = vperm.xlu0 %172, %v176_v28  }
 0x1cc   :  { %v84_v29 = vpop.permute.xlu1 %83 }
 0x1cd   :  { %v87_v30 = vpop.permute.xlu0 %86  ;;  %v91_v31 = vrot.slane %v84_v29, %v50_v11 }
 0x1ce   :  { %v95_v32 = vrot.slane %v87_v30, %v50_v11 }
 0x1d0   :  { %v96_v33 = vsel %vm56_vm1, %v95_v32, %v91_v31 }
 0x1d1   :  { %v98_v34 = vsel %vm59_vm2, %v96_v33, 0.0 }
 0x1d2   :  { %99 = vadd.xlane.f32.xlu1 %v98_v34 }
 0x25f   :  { %v100_v35 = vpop.xlane.xlu1 %99 }
 0x260   :  { %177 = vrcp.f32 %v100_v35 }
 0x26a   :  { %v178_v36 = vpop.eup %177 }
 0x26b   :  { %v102_v37 = vmul.f32 %v178_v36, %v100_v35 }
 0x26d   :  { %v103_v38 = vsub.f32 2.0, %v102_v37 }
 0x26f   :  { %v104_v39 = vmul.f32 %v178_v36, %v103_v38 }
 0x271   :  { %v109_v40 = vrot.slane %v104_v39, %v66_v18  ;;  %v113_v41 = vrot.slane %v104_v39, %v70_v19 }
 0x273   :  { %v116_v42 = vmul.f32 %v174_v27, %v109_v40  ;;  %v117_v43 = vmul.f32 %v176_v28, %v113_v41 }
 0x275   :  { %120 = vperm.xlu0 %172, %v116_v42  }
 0x279   :  { %125 = vperm.xlu0 %172, %v117_v43  }
 0x2f4   :  { %v121_v44 = vpop.permute.xlu0 %120 }
 0x2f5   :  { %v128_v45 = vmul.f32 %v121_v44, %v26_v0 }
 0x2f7   :  { %v130_v46 = vsel %vm37_vm0, %v128_v45, 0.0 }
 0x2f8   :  { %v131_v47 = vrot.slane %v130_v46, 4  ;;  %v126_v48 = vpop.permute.xlu0 %125 }
 0x2f9   :  { %v129_v49 = vmul.f32 %v126_v48, %v27_v2 }
 0x2fa   :  { %v132_v50 = vadd.f32 %v131_v47, %v130_v46 }
 0x2fb   :  { %v137_v51 = vsel %vm37_vm0, %v129_v49, 0.0 }
 0x2fc   :  { %v133_v52 = vrot.slane %v132_v50, 2  ;;  %v138_v53 = vrot.slane %v137_v51, 4 }
 0x2fe   :  { %v134_v54 = vadd.f32 %v133_v52, %v132_v50  ;;  %v139_v55 = vadd.f32 %v138_v53, %v137_v51 }
 0x300   :  { %v140_v56 = vrot.slane %v139_v55, 2  ;;  %v135_v57 = vrot.slane %v134_v54, 1 }
 0x302   :  { %v141_v58 = vadd.f32 %v140_v56, %v139_v55  ;;  %v136_v60 = vadd.f32 %v135_v57, %v134_v54 }
 0x304   :  { %v142_v59 = vrot.slane %v141_v58, 1 }
 0x306   :  { %v143_v61 = vadd.f32 %v142_v59, %v141_v58 }
 0x308   :  { %v146_v62 = vsel %vm56_vm1, %v143_v61, %v136_v60 }
 0x309   :  { %149 = vst.msk [vmem:[#allocation5] sm:$0x3] %vm148_vm3, %v146_v62 }
 0x30a   :  { %212 = shalt.err (!%p209_p12)
}
 0x30b   :  { %s213_s28 = scalar_lea.hbm %s285_s2, 32 }
 0x30c   :  { %p214_p13 = scmp.ne.s32.totalorder %s285_s2, %s213_s28  ;;  %p217_p0 = scmp.lt.u32.totalorder %s213_s28, %s285_s2 }
 0x30e   :  { %p219_p1 = pnand %p217_p0, %p214_p13 }
 0x310   :  { %222 = shalt.err (!%p219_p1)
}
 0x311   :  { %159 = dma.vmem_to_hbm [thread:$0]  %s157_s1, 32, %s285_s2, [#allocation4]  }
 0x312   :  { %225 = dma.done.wait [#allocation4], 32  }
 0x313   :  { %226 = vsyncadd [#allocation4], 4294967264 }
 0x314   :  { %163 = vsyncpa [#allocation3], 1 }
 0x315   :  { %164 = vsyncpa [#allocation4], 1 }

</bundles_post_ra>
